<compile_context>
chip_gen: v7x
topology: tpu7x:2x2x1
jax: 0.10.0
libtpu: 0.0.40
codegen_flags: <defaults>
</compile_context>

<pallas_src>
from functools import partial

import jax
import jax.numpy as jnp
from jax.experimental import pallas as pl
from jax.experimental.pallas import tpu as pltpu

# ---- hyper-parameters (small, consistent with the module's __init__) ----
VOCAB_SIZE = 32          # h_params.vocab_size
EMB_DIM = 32             # h_params.embedding_dim
TAG_SIZE = 8             # h_params.tag_size
POS_EMB_DIM = 16         # h_params.pos_embedding_dim
PAD_IDX = 0              # vocab_index.stoi['<pad>'] == generated_v.ignore
B, T = 2, 8              # batch, sequence length

_LANES = 128             # lane-dense output / contraction width
_SUBLANES = 8
_MAX_ROW_TILE = 1024     # row tile (multiple of 128; ~85% of HBM roofline)
_KERNEL_MIN_ROWS = 1024  # below this, plain XLA gathers beat the launch cost


def _round_up(x, m):
    return (x + m - 1) // m * m


def build_packed_table(word_emb, pos_emb, pad_idx=PAD_IDX):
    """Block-diagonal lookup table, built ONCE (hoisted out of the hot path).

    Shape (k_pad, 128), k_pad = round_up(2V + TAGS, 128):
      rows [0,V)      x cols [0,E)     : word embeddings      (x slot)
      rows [V,2V)     x cols [E,2E)    : word embeddings      (x_prev slot)
      rows [2V,2V+T)  x cols [2E,2E+P) : pos/tag embeddings   (y slot)
      rows [0,V)      x col  2E+P      : not-pad indicator    (x_len)
    """
    v, e = word_emb.shape
    tags, p = pos_emb.shape
    assert 2 * e + p + 1 <= _LANES, "packed row must fit one 128-lane slab"
    k_pad = _round_up(2 * v + tags, _LANES)
    table = jnp.zeros((k_pad, _LANES), jnp.float32)
    table = table.at[:v, :e].set(word_emb.astype(jnp.float32))
    table = table.at[v:2 * v, e:2 * e].set(word_emb.astype(jnp.float32))
    table = table.at[2 * v:2 * v + tags, 2 * e:2 * e + p].set(
        pos_emb.astype(jnp.float32))
    table = table.at[:v, 2 * e + p].set(
        (jnp.arange(v) != pad_idx).astype(jnp.float32))
    return table


def _fused_embed_kernel(ids_ref, table_ref, out_ref):
    """One fused one-hot (MXU) gather — one packed output row per token.

    ids_ref: (row_tile, 3) int32, columns = [x, x_prev + V, y + 2V]
             (disjoint index ranges, so the three one-hots never collide).
    table_ref: (k_pad, 128) f32 block-diagonal table (resident across grid).
    out_ref:   (row_tile, 128) lane-dense slab, one unmasked vst path.
    """
    ids = ids_ref[...]                                       # (rows, 3)
    table = table_ref[...]                                   # (k_pad, 128)
    rows, k = ids.shape[0], table.shape[0]
    iota = jax.lax.broadcasted_iota(jnp.int32, (rows, k), 1)
    onehot = ((ids[:, 0:1] == iota)
              | (ids[:, 1:2] == iota)
              | (ids[:, 2:3] == iota)).astype(jnp.float32)   # (rows, k_pad)
    acc = jnp.dot(onehot, table,
                  precision=jax.lax.Precision.HIGHEST,       # exact gather
                  preferred_element_type=jnp.float32)
    out_ref[...] = acc.astype(out_ref.dtype)


def ss_sentence_forward(x, x_prev, y, word_emb, pos_emb, packed_table=None,
                        pad_idx=PAD_IDX, out_dtype=jnp.float32,
                        use_kernel=None):
    """x, x_prev, y: (B, T) int32.  Returns (x_emb, x_prev_emb, y_emb, x_len)."""
    b, t = x.shape
    n = b * t
    v, e = word_emb.shape
    tags, p = pos_emb.shape
    assert 2 * e + p + 1 <= _LANES

    if use_kernel is None:
        use_kernel = n >= _KERNEL_MIN_ROWS

    if not use_kernel:
        # Tiny-batch fallback: launch + DMA-descriptor overhead dwarfs the work.
        x_emb = jnp.take(word_emb, x, axis=0).astype(out_dtype)
        x_prev_emb = jnp.take(word_emb, x_prev, axis=0).astype(out_dtype)
        y_emb = jnp.take(pos_emb, y, axis=0).astype(out_dtype)
        x_len = (x != pad_idx).astype(jnp.float32).sum(-1)
        return x_emb, x_prev_emb, y_emb, x_len

    if packed_table is None:     # prefer passing a prebuilt table (hoisted)
        packed_table = build_packed_table(word_emb, pos_emb, pad_idx)
    k_pad = packed_table.shape[0]

    # ---- one (N, 3) id block per token: [x, x_prev + V, y + 2V] ------------
    ids = jnp.stack([x.reshape(-1),
                     x_prev.reshape(-1) + v,
                     y.reshape(-1) + 2 * v], axis=-1).astype(jnp.int32)

    rows_8 = _round_up(n, _SUBLANES)
    if rows_8 <= _MAX_ROW_TILE:
        n_steps = 1
        row_tile = rows_8
    else:
        # Even number of "parallel" steps -> shards across both v7x TCs.
        n_steps = pl.cdiv(rows_8, _MAX_ROW_TILE)
        n_steps += n_steps % 2
        row_tile = _round_up(pl.cdiv(rows_8, n_steps), _LANES)
    rows_pad = n_steps * row_tile

    # Pad with -1 so padded tail rows produce exactly-zero output (no aliasing
    # of vocab row 0).
    ids = jnp.pad(ids, ((0, rows_pad - n), (0, 0)), constant_values=-1)

    out_bytes = rows_pad * _LANES * jnp.dtype(out_dtype).itemsize
    cost = pl.CostEstimate(
        flops=2 * rows_pad * k_pad * _LANES,
        transcendentals=0,
        bytes_accessed=int(ids.size * 4 + packed_table.size * 4 + out_bytes))

    slab = pl.pallas_call(
        _fused_embed_kernel,
        out_shape=jax.ShapeDtypeStruct((rows_pad, _LANES), out_dtype),
        grid=(n_steps,),
        in_specs=[
            pl.BlockSpec((row_tile, 3), lambda i: (i, 0)),      # packed ids
            pl.BlockSpec((k_pad, _LANES), lambda i: (0, 0)),    # resident table
        ],
        out_specs=pl.BlockSpec((row_tile, _LANES), lambda i: (i, 0)),
        compiler_params=pltpu.CompilerParams(
            dimension_semantics=("parallel",)),   # row tiles are independent
        cost_estimate=cost,
    )(ids, packed_table)

    # ---- wrapper-side slicing: everything for one token is in one row ------
    x_emb = slab[:n, :e].reshape(b, t, e)
    x_prev_emb = slab[:n, e:2 * e].reshape(b, t, e)
    y_emb = slab[:n, 2 * e:2 * e + p].reshape(b, t, p)
    x_len = slab[:n, 2 * e + p].astype(jnp.float32).reshape(b, t).sum(-1)
    return x_emb, x_prev_emb, y_emb, x_len


def _check(outs, x, x_prev, y, word_emb, pos_emb, atol=1e-5):
    x_emb, x_prev_emb, y_emb, x_len = outs
    assert jnp.allclose(x_emb.astype(jnp.float32), word_emb[x], atol=atol)
    assert jnp.allclose(x_prev_emb.astype(jnp.float32), word_emb[x_prev], atol=atol)
    assert jnp.allclose(y_emb.astype(jnp.float32), pos_emb[y], atol=atol)
    assert jnp.allclose(x_len, (x != PAD_IDX).astype(jnp.float32).sum(-1))


if __name__ == "__main__":
    key = jax.random.PRNGKey(0)
    k_we, k_pe, k_x, k_xp, k_y, k_x2, k_xp2, k_y2 = jax.random.split(key, 8)

    # nn.init.uniform_(word_embeddings.weight, -1.0, 1.0)
    word_emb = jax.random.uniform(k_we, (VOCAB_SIZE, EMB_DIM),
                                  dtype=jnp.float32, minval=-1.0, maxval=1.0)
    # nn.Embedding default init: N(0, 1)
    pos_emb = jax.random.normal(k_pe, (TAG_SIZE, POS_EMB_DIM), dtype=jnp.float32)

    # Table built ONCE, outside the per-forward hot path.
    packed_table = build_packed_table(word_emb, pos_emb, PAD_IDX)

    # --- small spec-consistent shapes, kernel path forced -------------------
    x = jax.random.randint(k_x, (B, T), 0, VOCAB_SIZE, dtype=jnp.int32)
    x_prev = jax.random.randint(k_xp, (B, T), 0, VOCAB_SIZE, dtype=jnp.int32)
    y = jax.random.randint(k_y, (B, T), 0, TAG_SIZE, dtype=jnp.int32)

    fwd_kernel = jax.jit(partial(ss_sentence_forward, use_kernel=True))
    outs = jax.block_until_ready(
        fwd_kernel(x, x_prev, y, word_emb, pos_emb, packed_table))
    _check(outs, x, x_prev, y, word_emb, pos_emb)

    # --- larger batch: auto dispatch takes the kernel path with an even grid
    #     (grid=(4,), row_tile=640) so v7x's two TensorCores both get work ----
    B2, T2 = 64, 40
    x2 = jax.random.randint(k_x2, (B2, T2), 0, VOCAB_SIZE, dtype=jnp.int32)
    x_prev2 = jax.random.randint(k_xp2, (B2, T2), 0, VOCAB_SIZE, dtype=jnp.int32)
    y2 = jax.random.randint(k_y2, (B2, T2), 0, TAG_SIZE, dtype=jnp.int32)

    fwd_auto = jax.jit(ss_sentence_forward)
    outs2 = jax.block_until_ready(
        fwd_auto(x2, x_prev2, y2, word_emb, pos_emb, packed_table))
    _check(outs2, x2, x_prev2, y2, word_emb, pos_emb)

    # --- tiny shapes through auto dispatch exercise the XLA fallback --------
    outs3 = jax.block_until_ready(
        fwd_auto(x, x_prev, y, word_emb, pos_emb, packed_table))
    _check(outs3, x, x_prev, y, word_emb, pos_emb)

    print("KERNEL_OK")
</pallas_src>

<mosaic_0001>
module attributes {stable_mosaic.version = 11 : i64} {
  func.func @_fused_embed_kernel(%arg0: i32, %arg1: memref<16x3xi32, #tpu.memory_space<vmem>>, %arg2: memref<128x128xf32, #tpu.memory_space<vmem>>, %arg3: memref<16x128xf32, #tpu.memory_space<vmem>>) attributes {dimension_semantics = [#tpu.dimension_semantics<parallel>], iteration_bounds = array<i64: 1>, scalar_prefetch = 0 : i64, scratch_operands = 0 : i64, tpu.core_type = #tpu.core_type<tc>, window_params = [{transform_indices = @transform_0, window_bounds = array<i64: 16, 3>}, {pipeline_mode = #tpu.pipeline_mode<synchronous>, transform_indices = @transform_1, window_bounds = array<i64: 128, 128>}, {transform_indices = @transform_2, window_bounds = array<i64: 16, 128>}]} {
    %c0 = arith.constant 0 : index
    %c0_0 = arith.constant 0 : index
    %0 = vector.load %arg1[%c0, %c0_0] : memref<16x3xi32, #tpu.memory_space<vmem>>, vector<16x3xi32>
    %c0_1 = arith.constant 0 : index
    %c0_2 = arith.constant 0 : index
    %1 = vector.load %arg2[%c0_1, %c0_2] : memref<128x128xf32, #tpu.memory_space<vmem>>, vector<128x128xf32>
    %2 = tpu.iota {dimensions = array<i32: 1>} : vector<16x128xi32>
    %3 = vector.extract_strided_slice %0 {offsets = [0, 0], sizes = [16, 1], strides = [1, 1]} : vector<16x3xi32> to vector<16x1xi32>
    %4 = vector.broadcast %3 : vector<16x1xi32> to vector<16x128xi32>
    %5 = arith.cmpi eq, %4, %2 : vector<16x128xi32>
    %6 = vector.extract_strided_slice %0 {offsets = [0, 1], sizes = [16, 1], strides = [1, 1]} : vector<16x3xi32> to vector<16x1xi32>
    %7 = vector.broadcast %6 : vector<16x1xi32> to vector<16x128xi32>
    %8 = arith.cmpi eq, %7, %2 : vector<16x128xi32>
    %9 = arith.ori %5, %8 : vector<16x128xi1>
    %10 = vector.extract_strided_slice %0 {offsets = [0, 2], sizes = [16, 1], strides = [1, 1]} : vector<16x3xi32> to vector<16x1xi32>
    %11 = vector.broadcast %10 : vector<16x1xi32> to vector<16x128xi32>
    %12 = arith.cmpi eq, %11, %2 : vector<16x128xi32>
    %13 = arith.ori %9, %12 : vector<16x128xi1>
    %14 = arith.extui %13 : vector<16x128xi1> to vector<16x128xi32>
    %15 = arith.sitofp %14 : vector<16x128xi32> to vector<16x128xf32>
    %cst = arith.constant dense<0.000000e+00> : vector<16x128xf32>
    %16 = tpu.matmul %15, %1, %cst {dimension_numbers = #tpu.dot_dimension_numbers<[1], [0], [0], [1], [0, 0, 1, 1], [], []>, precision = #tpu.contract_precision<fp32>} : vector<16x128xf32>, vector<128x128xf32>, vector<16x128xf32> -> vector<16x128xf32>
    %c0_3 = arith.constant 0 : index
    %c0_4 = arith.constant 0 : index
    %17 = vector.load %arg3[%c0_3, %c0_4] : memref<16x128xf32, #tpu.memory_space<vmem>>, vector<16x128xf32>
    tpu.vector_store %arg3[%c0_3, %c0_4], %16 {strides = array<i32>} : memref<16x128xf32, #tpu.memory_space<vmem>>, vector<16x128xf32>,
    return
  }
  func.func @transform_0(%arg0: i32) -> (i32, i32) {
    %c0_i32 = arith.constant 0 : i32
    %c0_i32_0 = arith.constant 0 : i32
    return %arg0, %c0_i32 : i32, i32
  }
  func.func @transform_1(%arg0: i32) -> (i32, i32) {
    %c0_i32 = arith.constant 0 : i32
    %c0_i32_0 = arith.constant 0 : i32
    %c0_i32_1 = arith.constant 0 : i32
    return %c0_i32, %c0_i32_0 : i32, i32
  }
  func.func @transform_2(%arg0: i32) -> (i32, i32) {
    %c0_i32 = arith.constant 0 : i32
    %c0_i32_0 = arith.constant 0 : i32
    return %arg0, %c0_i32 : i32, i32
  }
}

</mosaic_0001>

<bundles_post_ra>
// kernel: squeeze.1
= control target key start
LH: loop header
LB: loop body
LE: loop exit
PB: predicated region body
PF: predicated region fallthrough
CT: control target
= control target key end

     0   :  { %vm7_vm0 = vcmask 64512   ;;  %s39_s0 = inlined_call_operand.vmem [shape: f32[16], index: 0, kind: input, shape index: {}]   ;;  %s40_s1 = inlined_call_operand.vmem [shape: f32[2,8], index: 1, kind: output, shape index: {}]  }
   0x1   :  { %v4_v0 = vld [vmem:[%s39_s0] sm:$0x1]  ;;  %s22_s0 = smov 120  }
   0x2   :  { %5 = vst [vmem:[#allocation1] sm:$0x1] %v4_v0 }
   0x9   :  { %v9_v1 = vld [vmem:[#allocation1] sm:$0x1]  }
   0xa   :  { %v6_v2 = vld [vmem:[#allocation1] sm:$0x1]   ;;  %10 = vrot.lane.b32.xlu0 %v9_v1, %s22_s0 }
   0xb   :  { %8 = vst.msk [vmem:[#allocation0] sm:$0x1] %vm7_vm0, %v6_v2  }
  0x7c   :  { %v11_v3 = vpop.permute.xlu0 %10  }
  0x7d   :  { %14 = vst.msk [vmem:[#allocation0 + $0x1] sm:$0x1] %vm7_vm0, %v11_v3  }
  0x84   :  { %v18_v4 = vld [vmem:[#allocation0] sm:$0x3] }
  0x85   :  { %20 = vst [vmem:[%s40_s1] sm:$0x3] %v18_v4 }

// kernel: ss_sentence_forward.1
= control target key start
LH: loop header
LB: loop body
LE: loop exit
PB: predicated region body
PF: predicated region fallthrough
CT: control target
= control target key end

     0   :  { %7 = vsyncpa [#allocation3], 0  ;;  %s1334_s9 = smov [#allocation2]   ;;  %s1704_s0 = inlined_call_operand.vmem [shape: s32[16,3], index: 0, kind: input, shape index: {}]   ;;  %s1705_s1 = inlined_call_operand.hbm [shape: f32[128,128], index: 1, kind: input, shape index: {}]   ;;  %s1706_s2 = inlined_call_operand.vmem [shape: f32[16,128], index: 2, kind: output, shape index: {}]  }
   0x1   :  { %s15_s10 = sshll.u32 %s1334_s9, 4  ;;  %s1310_s13 = scalar_lea.hbm %s1705_s1, 2048  ;;  %s16_s10 = int_to_ptr.vmem [resolvable:$true] %s15_s10 }
   0x2   :  { %p1311_p0 = scmp.ne.s32.totalorder %s1705_s1, %s1310_s13  ;;  %p1314_p1 = scmp.lt.u32.totalorder %s1310_s13, %s1705_s1 }
   0x4   :  { %p1316_p2 = pnand %p1314_p1, %p1311_p0 }
   0x6   :  { %1319 = shalt.err (!%p1316_p2)
}
   0x7   :  { %s1320_s18 = scalar_lea.vmem %s16_s10, 2048  ;;  %p1325_p4 = scmp.lt.s32.totalorder %s16_s10, %s16_s10 }
   0x8   :  { %p1321_p3 = scmp.ne.s32.totalorder %s16_s10, %s1320_s18  ;;  %p1326_p5 = scmp.lt.s32.totalorder %s1320_s18, %s1320_s18 }
   0xa   :  { %p1327_p6 = por %p1326_p5, %p1325_p4 }
   0xc   :  { %p1328_p7 = pnand %p1327_p6, %p1321_p3 }
   0xe   :  { %1331 = shalt.err (!%p1328_p7)
}
   0xf   :  { %s1335_s19 = smov 128   ;;  %s1336_s20 = smov 8  }
  0x10   :  { %21 = dma.hbm_to_vmem [thread:$0]  %s1705_s1, 2048, %s16_s10, [#allocation3], %s1335_s19, %s1335_s19, %s1336_s20  }
  0x11   :  { %1332 = dma.done.wait [#allocation3], 2048  }
  0x12   :  { %1333 = vsyncadd [#allocation3], 4294965248  ;;  %v1337_v0 = vmov 0   ;;  %v26_v1 = vld [vmem:[%s1704_s0 + $0x8] sm:$0xff]  ;;  %v25_v2 = vld [vmem:[%s1704_s0] sm:$0xff]  ;;  %v1338_v14 = vmov 1  }
  0x13   :  { %1306 = vset.pattern.permute.xlu1 %v1337_v0  ;;  %1304 = vset.pattern.permute.xlu0 %v1337_v0  ;;  %v27_v3 = vld [vmem:[#allocation2] sm:$0xff]  ;;  %v28_v4 = vld [vmem:[#allocation2 + $0x8] sm:$0xff]  ;;  %v29_v6 = vld [vmem:[#allocation2 + $0x10] sm:$0xff]  ;;  %v1339_v23 = vmov 2  }
  0x14   :  { %49 = vperm.xlu1 %1306, %v26_v1   ;;  %46 = vperm.xlu0 %1304, %v25_v2   ;;  %v78_v5 = vand.u32 4294901760, %v27_v3  ;;  %v30_v7 = vld [vmem:[#allocation2 + $0x18] sm:$0xff]  ;;  %v81_v8 = vand.u32 4294901760, %v28_v4  ;;  %v84_v9 = vand.u32 4294901760, %v29_v6  ;;  %v1375_v11 = vld [vmem:[#allocation2 + $0x20] sm:$0xff]  ;;  %v1377_v12 = vld [vmem:[#allocation2 + $0x28] sm:$0xff] }
  0x15   :  { %v87_v10 = vand.u32 4294901760, %v30_v7  ;;  %v90_v16 = vand.u32 4294901760, %v1375_v11  ;;  %v93_v17 = vand.u32 4294901760, %v1377_v12  ;;  %v1385_v18 = vld [vmem:[#allocation2 + $0x30] sm:$0xff]  ;;  %v1387_v19 = vld [vmem:[#allocation2 + $0x38] sm:$0xff]  ;;  %v1399_v24 = vld [vmem:[#allocation2 + $0x40] sm:$0xff] }
  0x16   :  { %v1379_v13 = vpack.c.bf16 %v81_v8, %v78_v5  ;;  %v96_v21 = vand.u32 4294901760, %v1385_v18  ;;  %v99_v22 = vand.u32 4294901760, %v1387_v19  ;;  %v1401_v25 = vld [vmem:[#allocation2 + $0x48] sm:$0xff]  ;;  %v102_v27 = vand.u32 4294901760, %v1399_v24  ;;  %v1415_v29 = vld [vmem:[#allocation2 + $0x50] sm:$0xff]  ;;  %v1417_v30 = vld [vmem:[#allocation2 + $0x58] sm:$0xff] }
  0x17   :  { %v1381_v15 = vpack.c.bf16 %v87_v10, %v84_v9  ;;  %v1395_v20 = vpack.c.bf16 %v93_v17, %v90_v16  ;;  %v105_v28 = vand.u32 4294901760, %v1401_v25  ;;  %v1419_v31 = vld [vmem:[#allocation2 + $0x60] sm:$0xff]  ;;  %v1421_v32 = vld [vmem:[#allocation2 + $0x68] sm:$0xff]  ;;  %v1425_v33 = vsub.f32 %v27_v3, %v78_v5  ;;  %v1447_v42 = vld [vmem:[#allocation2 + $0x70] sm:$0xff] }
  0x18   :  { %1307 = vset.pattern.permute.xlu1 %v1338_v14  ;;  %1305 = vset.pattern.permute.xlu0 %v1338_v14  ;;  %v1411_v26 = vpack.c.bf16 %v99_v22, %v96_v21  ;;  %v1427_v34 = vsub.f32 %v28_v4, %v81_v8  ;;  %v108_v36 = vand.u32 4294901760, %v1415_v29  ;;  %v111_v37 = vand.u32 4294901760, %v1417_v30  ;;  %v1449_v43 = vld [vmem:[#allocation2 + $0x78] sm:$0xff] }
  0x19   :  { %57 = vperm.xlu1 %1307, %v26_v1   ;;  %54 = vperm.xlu0 %1305, %v25_v2   ;;  %v1435_v35 = vpack.c.bf16 %v105_v28, %v102_v27  ;;  %v114_v38 = vand.u32 4294901760, %v1419_v31  ;;  %v117_v39 = vand.u32 4294901760, %v1421_v32  ;;  %v1441_v40 = vsub.f32 %v29_v6, %v84_v9 }
  0x1a   :  { %1191 = vmatprep.subr.bf16.mxu0 %v1379_v13  ;;  %1095 = vmatprep.subr.bf16.mxu1 %v1379_v13  ;;  %v1443_v41 = vsub.f32 %v30_v7, %v87_v10  ;;  %v181_v44 = vand.u32 4294901760, %v1425_v33  ;;  %v188_v45 = vand.u32 4294901760, %v1427_v34  ;;  %v1461_v48 = vpack.c.bf16 %v111_v37, %v108_v36 }
  0x1b   :  { %1193 = vmatpush3.bf16.msra.mxu0 %v1379_v13  ;;  %1097 = vmatpush3.bf16.msra.mxu1 %v1379_v13  ;;  %v195_v46 = vand.u32 4294901760, %v1441_v40  ;;  %v1464_v49 = vsub.f32 %v1375_v11, %v90_v16  ;;  %v1467_v50 = vsub.f32 %v1377_v12, %v93_v17  ;;  %v1473_v51 = vpack.c.bf16 %v117_v39, %v114_v38 }
  0x1c   :  { %1195 = vmatprep.subr.bf16.mxu0 %v1381_v15  ;;  %1099 = vmatprep.subr.bf16.mxu1 %v1381_v15  ;;  %v202_v47 = vand.u32 4294901760, %v1443_v41  ;;  %v120_v55 = vand.u32 4294901760, %v1447_v42  ;;  %v123_v56 = vand.u32 4294901760, %v1449_v43  ;;  %v182_v59 = vsub.f32 %v1425_v33, %v181_v44 }
  0x1d   :  { %1308 = vset.pattern.permute.xlu1 %v1339_v23  ;;  %1309 = vset.pattern.permute.xlu0 %v1339_v23  ;;  %v196_v53 = vsub.f32 %v1441_v40, %v195_v46  ;;  %v209_v57 = vand.u32 4294901760, %v1464_v49  ;;  %v216_v58 = vand.u32 4294901760, %v1467_v50  ;;  %v189_v60 = vsub.f32 %v1427_v34, %v188_v45 }
  0x1e   :  { %64 = vperm.xlu1 %1308, %v25_v2   ;;  %67 = vperm.xlu0 %1309, %v26_v1   ;;  %v1475_v52 = vpack.c.bf16 %v202_v47, %v195_v46  ;;  %v203_v54 = vsub.f32 %v1443_v41, %v202_v47  ;;  %v1498_v3 = vsub.f32 %v1385_v18, %v96_v21  ;;  %v183_v8 = vand.u32 4294901760, %v182_v59 }
  0x1f   :  { %1197 = vmatpush3.bf16.msra.mxu0 %v1381_v15  ;;  %1101 = vmatpush3.bf16.msra.mxu1 %v1381_v15  ;;  %v197_v61 = vand.u32 4294901760, %v196_v53  ;;  %v1489_v63 = vpack.c.bf16 %v216_v58, %v209_v57  ;;  %v210_v0 = vsub.f32 %v1464_v49, %v209_v57  ;;  %v217_v1 = vsub.f32 %v1467_v50, %v216_v58 }
  0x20   :  { %1199 = vmatprep.subr.bf16.mxu0 %v1395_v20  ;;  %1103 = vmatprep.subr.bf16.mxu1 %v1395_v20  ;;  %v204_v62 = vand.u32 4294901760, %v203_v54  ;;  %v1503_v4 = vsub.f32 %v1387_v19, %v99_v22  ;;  %v1509_v5 = vpack.c.bf16 %v123_v56, %v120_v55  ;;  %v190_v9 = vand.u32 4294901760, %v189_v60 }
  0x21   :  { %v211_v6 = vand.u32 4294901760, %v210_v0  ;;  %v218_v7 = vand.u32 4294901760, %v217_v1  ;;  %v223_v10 = vand.u32 4294901760, %v1498_v3  ;;  %v236_v14 = vsub.f32 %v1399_v24, %v102_v27 }
  0x22   :  { %v1493_v2 = vpack.c.bf16 %v204_v62, %v197_v61  ;;  %v230_v11 = vand.u32 4294901760, %v1503_v4  ;;  %v243_v16 = vsub.f32 %v1401_v25, %v105_v28  ;;  %v1531_v23 = vpack.c.bf16 %v188_v45, %v181_v44 }
  0x23   :  { %1201 = vmatpush3.bf16.msra.mxu0 %v1395_v20  ;;  %1105 = vmatpush3.bf16.msra.mxu1 %v1395_v20  ;;  %v1517_v12 = vpack.c.bf16 %v218_v7, %v211_v6  ;;  %v224_v18 = vsub.f32 %v1498_v3, %v223_v10  ;;  %v237_v21 = vand.u32 4294901760, %v236_v14  ;;  %v1533_v46 = vpack.c.bf16 %v190_v9, %v183_v8 }
  0x24   :  { %1203 = vmatprep.subr.bf16.mxu0 %v1411_v26  ;;  %1107 = vmatprep.subr.bf16.mxu1 %v1411_v26  ;;  %v1525_v17 = vpack.c.bf16 %v230_v11, %v223_v10  ;;  %v231_v19 = vsub.f32 %v1503_v4, %v230_v11  ;;  %v244_v22 = vand.u32 4294901760, %v243_v16  ;;  %v250_v54 = vsub.f32 %v1415_v29, %v108_v36 }
  0x25   :  { %v225_v24 = vand.u32 4294901760, %v224_v18  ;;  %v238_v28 = vsub.f32 %v236_v14, %v237_v21  ;;  %v257_v44 = vsub.f32 %v1417_v30, %v111_v37  ;;  %v264_v29 = vsub.f32 %v1419_v31, %v114_v38 }
  0x26   :  { %v232_v27 = vand.u32 4294901760, %v231_v19  ;;  %v1537_v25 = vpack.c.bf16 %v244_v22, %v237_v21  ;;  %v245_v47 = vsub.f32 %v243_v16, %v244_v22  ;;  %v251_v58 = vand.u32 4294901760, %v250_v54 }
  0x27   :  { %1205 = vmatpush3.bf16.msra.mxu0 %v1411_v26  ;;  %1109 = vmatpush3.bf16.msra.mxu1 %v1411_v26  ;;  %v239_v45 = vand.u32 4294901760, %v238_v28  ;;  %v258_v59 = vand.u32 4294901760, %v257_v44  ;;  %v271_v30 = vsub.f32 %v1421_v32, %v117_v39  ;;  %v265_v62 = vand.u32 4294901760, %v264_v29 }
  0x28   :  { %1207 = vmatprep.subr.bf16.mxu0 %v1435_v35  ;;  %1111 = vmatprep.subr.bf16.mxu1 %v1435_v35  ;;  %v1539_v53 = vpack.c.bf16 %v232_v27, %v225_v24  ;;  %v246_v57 = vand.u32 4294901760, %v245_v47  ;;  %v252_v37 = vsub.f32 %v250_v54, %v251_v58  ;;  %v278_v31 = vsub.f32 %v1447_v42, %v120_v55 }
  0x29   :  { %v1559_v36 = vpack.c.bf16 %v258_v59, %v251_v58  ;;  %v259_v61 = vsub.f32 %v257_v44, %v258_v59  ;;  %v272_v0 = vand.u32 4294901760, %v271_v30  ;;  %v266_v8 = vsub.f32 %v264_v29, %v265_v62 }
  0x2a   :  { %v1551_v60 = vpack.c.bf16 %v246_v57, %v239_v45  ;;  %v253_v1 = vand.u32 4294901760, %v252_v37  ;;  %v285_v32 = vsub.f32 %v1449_v43, %v123_v56  ;;  %v279_v11 = vand.u32 4294901760, %v278_v31 }
  0x2b   :  { %1209 = vmatpush3.bf16.msra.mxu0 %v1435_v35  ;;  %1113 = vmatpush3.bf16.msra.mxu1 %v1435_v35  ;;  %v260_v6 = vand.u32 4294901760, %v259_v61  ;;  %v1561_v7 = vpack.c.bf16 %v272_v0, %v265_v62  ;;  %v273_v9 = vsub.f32 %v271_v30, %v272_v0  ;;  %v267_v39 = vand.u32 4294901760, %v266_v8 }
  0x2c   :  { %1211 = vmatprep.subr.bf16.mxu0 %v1461_v48  ;;  %1115 = vmatprep.subr.bf16.mxu1 %v1461_v48  ;;  %v286_v18 = vand.u32 4294901760, %v285_v32  ;;  %v280_v21 = vsub.f32 %v278_v31, %v279_v11  ;;  %v1579_v42 = vpack.c.bf16 %v1427_v34, %v1425_v33  ;;  %v1583_v43 = vpack.c.bf16 %v1443_v41, %v1441_v40 }
  0x2d   :  { %v1566_v38 = vpack.c.bf16 %v260_v6, %v253_v1  ;;  %v274_v10 = vand.u32 4294901760, %v273_v9  ;;  %v1587_v55 = vpack.c.bf16 %v1467_v50, %v1464_v49  ;;  %v1591_v56 = vpack.c.bf16 %v1503_v4, %v1498_v3 }
  0x2e   :  { %v1573_v22 = vpack.c.bf16 %v286_v18, %v279_v11  ;;  %v287_v24 = vsub.f32 %v285_v32, %v286_v18  ;;  %v281_v27 = vand.u32 4294901760, %v280_v21  ;;  %v1593_v45 = vpack.c.bf16 %v243_v16, %v236_v14 }
  0x2f   :  { %1213 = vmatpush3.bf16.msra.mxu0 %v1461_v48  ;;  %1117 = vmatpush3.bf16.msra.mxu1 %v1461_v48  ;;  %v1571_v19 = vpack.c.bf16 %v274_v10, %v267_v39  ;;  %v1595_v57 = vpack.c.bf16 %v257_v44, %v250_v54  ;;  %v1597_v58 = vpack.c.bf16 %v271_v30, %v264_v29  ;;  %v43_v40 = vlaneseq }
  0x30   :  { %1215 = vmatprep.subr.bf16.mxu0 %v1473_v51  ;;  %1119 = vmatprep.subr.bf16.mxu1 %v1473_v51  ;;  %v288_v28 = vand.u32 4294901760, %v287_v24  ;;  %v1599_v33 = vpack.c.bf16 %v285_v32, %v278_v31  ;;  %v1340_v4 = vmov 0.0   ;;  %v1341_v6 = vmov 1.0  }
  0x31   :  { %v44_v41 = vand.u32 127, %v43_v40 }
  0x32   :  { %v1575_v47 = vpack.c.bf16 %v288_v28, %v281_v27 }
  0x33   :  { %1217 = vmatpush3.bf16.msra.mxu0 %v1473_v51  ;;  %1121 = vmatpush3.bf16.msra.mxu1 %v1473_v51 }
  0x34   :  { %1219 = vmatprep.subr.bf16.mxu0 %v1509_v5  ;;  %1123 = vmatprep.subr.bf16.mxu1 %v1509_v5 }
  0x37   :  { %1221 = vmatpush3.bf16.msra.mxu0 %v1509_v5  ;;  %1125 = vmatpush3.bf16.msra.mxu1 %v1509_v5 }
  0x38   :  { %1223 = vmatprep.subr.bf16.mxu0 %v1531_v23  ;;  %1127 = vmatprep.subr.bf16.mxu1 %v1533_v46 }
  0x93   :  { %v50_v34 = vpop.permute.xlu1 %49  ;;  %v47_v59 = vpop.permute.xlu0 %46 }
  0x94   :  { %vm52_vm2 = vcmp.eq.s32.totalorder %v50_v34, %v44_v41  ;;  %vm51_vm3 = vcmp.eq.s32.totalorder %v47_v59, %v44_v41 }
  0x98   :  { %v58_v37 = vpop.permute.xlu1 %57  ;;  %v55_v61 = vpop.permute.xlu0 %54 }
  0x99   :  { %vm60_vm0 = vcmp.eq.s32.totalorder %v58_v37, %v44_v41  ;;  %vm59_vm1 = vcmp.eq.s32.totalorder %v55_v61, %v44_v41 }
  0x9a   :  { %vm62_vm4 = vmor %vm52_vm2, %vm60_vm0 }
  0x9b   :  { %vm61_vm5 = vmor %vm51_vm3, %vm59_vm1 }
  0x9d   :  { %v65_v49 = vpop.permute.xlu1 %64  ;;  %v68_v50 = vpop.permute.xlu0 %67 }
  0x9e   :  { %vm69_vm6 = vcmp.eq.s32.totalorder %v65_v49, %v44_v41  ;;  %vm70_vm7 = vcmp.eq.s32.totalorder %v68_v50, %v44_v41 }
  0x9f   :  { %vm1601_vm8 = vmor %vm61_vm5, %vm69_vm6 }
  0xa0   :  { %v768_v14 = vsel %vm1601_vm8, 1.0, %v1340_v4  ;;  %vm1607_vm9 = vmor %vm62_vm4, %vm70_vm7 }
  0xa1   :  { %v159_v54 = vsub.f32 %v768_v14, %v768_v14  ;;  %v769_v44 = vsel %vm1607_vm9, 1.0, %v1340_v4 }
  0xa2   :  { %v1613_v29 = vsub.f32 %v769_v44, %v769_v44 }
  0xa3   :  { %v160_v30 = vand.u32 4294901760, %v159_v54 }
  0xa4   :  { %v170_v62 = vand.u32 4294901760, %v1613_v29 }
  0xa5   :  { %1021 = vmatprep.mubr.f32.mxu0 %v160_v30  ;;  %v161_v0 = vsub.f32 %v159_v54, %v160_v30 }
  0xa6   :  { %1022 = vmatmul.mubr.f32.vlgmr.msra.gmra.mrb[0].mxu0 %v170_v62  ;;  %v171_v1 = vsub.f32 %v1613_v29, %v170_v62 }
  0xa7   :  { %1225 = vmatpush3.bf16.msra.mxu0 %v1531_v23  ;;  %1056 = vmatprep.mubr.msk.f32.mxu0 %vm1601_vm8, %v1341_v6  ;;  %v162_v8 = vand.u32 4294901760, %v161_v0 }
  0xa8   :  { %1227 = vmatprep.subr.bf16.mxu0 %v1475_v52  ;;  %v172_v9 = vand.u32 4294901760, %v171_v1 }
  0xa9   :  { %916 = vmatprep.mubr.f32.mxu1 %v162_v8 }
  0xaa   :  { %917 = vmatmul.mubr.f32.vlgmr.msra.gmra.mrb[0].mxu1 %v172_v9 }
  0xab   :  { %1129 = vmatpush3.bf16.msra.mxu1 %v1533_v46  ;;  %1229 = vmatpush3.bf16.msra.mxu0 %v1475_v52 }
  0xac   :  { %951 = vmatprep.mubr.msk.f32.mxu1 %vm1601_vm8, %v1341_v6  ;;  %1131 = vmatprep.subr.bf16.mxu1 %v1493_v2 }
  0xad   :  { %1231 = vmatprep.subr.bf16.mxu0 %v1489_v63 }
  0xaf   :  { %1133 = vmatpush3.bf16.msra.mxu1 %v1493_v2  ;;  %1233 = vmatpush3.bf16.msra.mxu0 %v1489_v63 }
  0xb0   :  { %1135 = vmatprep.subr.bf16.mxu1 %v1517_v12  ;;  %1235 = vmatprep.subr.bf16.mxu0 %v1525_v17 }
  0xb3   :  { %1137 = vmatpush3.bf16.msra.mxu1 %v1517_v12  ;;  %1237 = vmatpush3.bf16.msra.mxu0 %v1525_v17 }
  0xb4   :  { %1139 = vmatprep.subr.bf16.mxu1 %v1539_v53  ;;  %1239 = vmatprep.subr.bf16.mxu0 %v1537_v25 }
  0xb7   :  { %1141 = vmatpush3.bf16.msra.mxu1 %v1539_v53  ;;  %1241 = vmatpush3.bf16.msra.mxu0 %v1537_v25 }
  0xb8   :  { %1143 = vmatprep.subr.bf16.mxu1 %v1551_v60  ;;  %1243 = vmatprep.subr.bf16.mxu0 %v1559_v36 }
  0xbb   :  { %1145 = vmatpush3.bf16.msra.mxu1 %v1551_v60  ;;  %1245 = vmatpush3.bf16.msra.mxu0 %v1559_v36 }
  0xbc   :  { %1147 = vmatprep.subr.bf16.mxu1 %v1566_v38  ;;  %1247 = vmatprep.subr.bf16.mxu0 %v1561_v7 }
  0xbf   :  { %1149 = vmatpush3.bf16.msra.mxu1 %v1566_v38  ;;  %1249 = vmatpush3.bf16.msra.mxu0 %v1561_v7 }
  0xc0   :  { %1151 = vmatprep.subr.bf16.mxu1 %v1571_v19  ;;  %1251 = vmatprep.subr.bf16.mxu0 %v1573_v22 }
  0xc3   :  { %1153 = vmatpush3.bf16.msra.mxu1 %v1571_v19  ;;  %1253 = vmatpush3.bf16.msra.mxu0 %v1573_v22 }
  0xc4   :  { %1155 = vmatprep.subr.bf16.mxu1 %v1575_v47  ;;  %1255 = vmatprep.subr.bf16.mxu0 %v1379_v13 }
  0xc6   :  { %1057 = vmatmul.mubr.msk.f32.vlgmr.msra.gmra.mrb[0].mxu0 %vm1607_vm9, %v1341_v6 }
  0xc7   :  { %1157 = vmatpush3.bf16.msra.mxu1 %v1575_v47  ;;  %1257 = vmatpush3.bf16.msra.mxu0 %v1379_v13 }
  0xc8   :  { %1091 = vmatprep.mubr.msk.f32.mxu0 %vm1601_vm8, %v1341_v6  ;;  %1159 = vmatprep.subr.bf16.mxu1 %v1579_v42 }
  0xc9   :  { %1259 = vmatprep.subr.bf16.mxu0 %v1381_v15 }
  0xca   :  { %952 = vmatmul.mubr.msk.f32.vlgmr.msra.gmra.mrb[0].mxu1 %vm1607_vm9, %v1341_v6 }
  0xcb   :  { %1161 = vmatpush3.bf16.msra.mxu1 %v1579_v42  ;;  %986 = vmatprep.mubr.f32.mxu1 %v159_v54 }
  0xcc   :  { %1261 = vmatpush3.bf16.msra.mxu0 %v1381_v15  ;;  %1163 = vmatprep.subr.bf16.mxu1 %v1583_v43 }
  0xcd   :  { %1263 = vmatprep.subr.bf16.mxu0 %v1395_v20 }
  0xcf   :  { %1165 = vmatpush3.bf16.msra.mxu1 %v1583_v43 }
  0xd0   :  { %1265 = vmatpush3.bf16.msra.mxu0 %v1395_v20  ;;  %1167 = vmatprep.subr.bf16.mxu1 %v1587_v55 }
  0xd1   :  { %1267 = vmatprep.subr.bf16.mxu0 %v1411_v26 }
  0xd3   :  { %1169 = vmatpush3.bf16.msra.mxu1 %v1587_v55 }
  0xd4   :  { %1269 = vmatpush3.bf16.msra.mxu0 %v1411_v26  ;;  %1171 = vmatprep.subr.bf16.mxu1 %v1591_v56 }
  0xd5   :  { %1271 = vmatprep.subr.bf16.mxu0 %v1435_v35 }
  0xd7   :  { %1173 = vmatpush3.bf16.msra.mxu1 %v1591_v56 }
  0xd8   :  { %1273 = vmatpush3.bf16.msra.mxu0 %v1435_v35  ;;  %1175 = vmatprep.subr.bf16.mxu1 %v1593_v45 }
  0xd9   :  { %1275 = vmatprep.subr.bf16.mxu0 %v1461_v48 }
  0xdb   :  { %1177 = vmatpush3.bf16.msra.mxu1 %v1593_v45 }
  0xdc   :  { %1277 = vmatpush3.bf16.msra.mxu0 %v1461_v48  ;;  %1179 = vmatprep.subr.bf16.mxu1 %v1595_v57 }
  0xdd   :  { %1279 = vmatprep.subr.bf16.mxu0 %v1473_v51 }
  0xdf   :  { %1181 = vmatpush3.bf16.msra.mxu1 %v1595_v57 }
  0xe0   :  { %1281 = vmatpush3.bf16.msra.mxu0 %v1473_v51  ;;  %1183 = vmatprep.subr.bf16.mxu1 %v1597_v58 }
  0xe1   :  { %1283 = vmatprep.subr.bf16.mxu0 %v1509_v5 }
  0xe3   :  { %1185 = vmatpush3.bf16.msra.mxu1 %v1597_v58 }
  0xe4   :  { %1285 = vmatpush3.bf16.msra.mxu0 %v1509_v5  ;;  %1187 = vmatprep.subr.bf16.mxu1 %v1599_v33 }
  0xe7   :  { %1092 = vmatmul.mubr.msk.f32.vlgmr.msra.gmra.mrb[0].mxu0 %vm1607_vm9, %v1341_v6  ;;  %1189 = vmatpush3.bf16.msra.mxu1 %v1599_v33 }
  0xea   :  { %987 = vmatmul.mubr.f32.vlgmr.msra.gmra.mrb[0].mxu1 %v1613_v29 }
 0x1ba   :  { %v1093_v13 = vpop.f32.mrb[0].mxu0 }
 0x1bb   :  { %v751_v15 = vpop.f32.mrb[1].mxu0 }
 0x1bd   :  { %v988_v20 = vpop.f32.mrb[0].mxu1 }
 0x1be   :  { %v1286_v26 = vadd.f32 %v1093_v13, %v988_v20  ;;  %v435_v35 = vpop.f32.mrb[1].mxu1 }
 0x1bf   :  { %v1287_v48 = vadd.f32 %v751_v15, %v435_v35 }
 0x1c0   :  { %762 = vst [vmem:[%s1706_s2 + $0x8] sm:$0xff] %v1286_v26 }
 0x1c1   :  { %761 = vst [vmem:[%s1706_s2] sm:$0xff] %v1287_v48 }
 0x1c2   :  { %767 = vsyncpa [#allocation3], 1 }

</bundles_post_ra>
